<compile_context>
chip_gen: v5e
topology: v5e:2x2
jax: 0.10.0
libtpu: 0.0.40
codegen_flags: <defaults>
</compile_context>

<pallas_src>
import jax
import jax.numpy as jnp
from jax.experimental import pallas as pl
from jax.experimental.pallas import tpu as pltpu


def _relu_offset_kernel(off_ref, x_ref, o_ref):
    # off_ref: (1,) scalar in SMEM; x_ref / o_ref: (tm, W) VMEM tiles.
    o_ref[...] = jnp.maximum(x_ref[...], off_ref[0])


def _pick_tile_rows(rows: int, width: int, itemsize: int, sublane: int,
                    target_tm: int, *, min_steps: int = 4,
                    split_threshold_bytes: int = 2 << 20) -> int:
    """Pick the block row count (tm) for a (rows, width) lane-dense view.

    * Small tensors (<= ~2 MiB) or fewer rows than one sublane tile: a single
      full-height block (block == array dims is always a legal tiling) — the fixed
      ~0.35 us/step pipeline cost would dominate if we split them.  If the caller
      forced a tiny target_tm (tests), honor that cap instead so tiling is exercised.
    * Larger tensors: the biggest sublane-multiple tile <= target_tm that still leaves
      >= min_steps grid steps, so v7x's two TensorCores each get >= 2 blocks and
      double-buffering has something to overlap.  min_steps=4 is the v7x-safe value;
      on single-TC v5e/v6e it is only mildly conservative.
    """
    if rows <= sublane or rows * width * itemsize <= split_threshold_bytes:
        return rows if rows <= target_tm else target_tm
    tm = min(target_tm, (rows // min_steps // sublane) * sublane)
    return max(sublane, tm)


def _run_kernel_2d(x2d: jax.Array, off: jax.Array, target_tile_elems: int,
                   donate_input: bool) -> jax.Array:
    """Run the elementwise-max kernel over a lane-dense (rows, width) array."""
    rows, width = x2d.shape
    dtype = x2d.dtype
    itemsize = jnp.dtype(dtype).itemsize
    # dtype-dependent minimum sublane multiple: 8 (f32), 16 (bf16), 32 (int8/fp8)
    sublane = max(8, 32 // itemsize)

    target_tm = max(sublane, (target_tile_elems // width // sublane) * sublane)
    tm = _pick_tile_rows(rows, width, itemsize, sublane, target_tm)
    grid = (pl.cdiv(rows, tm),)

    extra = {}
    if donate_input:
        # Output reuses the input's HBM buffer (inputs are (off, x2d) -> x2d is idx 1).
        extra["input_output_aliases"] = {1: 0}

    return pl.pallas_call(
        _relu_offset_kernel,
        out_shape=jax.ShapeDtypeStruct((rows, width), dtype),
        grid_spec=pl.GridSpec(
            grid=grid,
            in_specs=[
                pl.BlockSpec(memory_space=pltpu.MemorySpace.SMEM),  # scalar offset
                pl.BlockSpec((tm, width), lambda i: (i, 0)),        # input tile
            ],
            out_specs=pl.BlockSpec((tm, width), lambda i: (i, 0)),
        ),
        compiler_params=pltpu.CompilerParams(
            dimension_semantics=("parallel",),
            vmem_limit_bytes=48 << 20,
        ),
        cost_estimate=pl.CostEstimate(
            flops=0,
            transcendentals=0,
            bytes_accessed=2 * rows * width * itemsize,
        ),
        **extra,
    )(off, x2d)


def relu_with_offset(x: jax.Array, offset, *, target_tile_elems: int = 1 << 20,
                     donate_input: bool = False) -> jax.Array:
    """Pallas implementation of torch.maximum(x, offset) with a scalar offset param."""
    orig_shape = x.shape

    # Match torch promotion: maximum(bf16 x, fp32 param) -> fp32 result.
    off = jnp.asarray(offset)
    out_dtype = jnp.promote_types(x.dtype, off.dtype)
    off = off.astype(out_dtype).reshape(1)

    n = x.size
    if n == 0:
        return x.astype(out_dtype)

    flat = x.astype(out_dtype).reshape(-1)

    # Lane-dense width: the largest multiple of 128 (<= 2048) dividing n exactly
    # -> zero-copy reshape path (no pad, no slice, no concat).
    width = next((c for c in range(2048, 127, -128) if n % c == 0), None)
    if width is not None:
        out2d = _run_kernel_2d(flat.reshape(n // width, width), off,
                               target_tile_elems, donate_input)
        return out2d.reshape(orig_shape)

    # Tiny tensors (< 128 elems): single block equal to the full array (legal tiling).
    if n < 128:
        out2d = _run_kernel_2d(flat.reshape(1, n), off, target_tile_elems, donate_input)
        return out2d.reshape(orig_shape)

    # Non-divisible fallback: kernel on the width-aligned prefix, tiny jnp.maximum on
    # the (< width) tail, one concatenate.  Avoids the old jnp.pad + out[:n] pair of
    # full-array HBM copies.
    width = min(2048, (n // 128) * 128)
    m = (n // width) * width
    main = _run_kernel_2d(flat[:m].reshape(m // width, width), off,
                          target_tile_elems, donate_input).reshape(-1)
    tail = jnp.maximum(flat[m:], off[0])
    return jnp.concatenate([main, tail]).reshape(orig_shape)


class ReLUWithOffset:
    """JAX/Pallas counterpart of the PyTorch ReLU_with_offset module."""

    def __init__(self, offset: float):
        # Matches torch.nn.Parameter(torch.tensor([offset]), requires_grad=False)
        self.offset = jnp.array([offset], dtype=jnp.float32)

    def __call__(self, x: jax.Array) -> jax.Array:
        return relu_with_offset(x, self.offset)


if __name__ == "__main__":
    key = jax.random.PRNGKey(0)
    k0, k1, k2, k3 = jax.random.split(key, 4)

    mod = ReLUWithOffset(offset=1.0)

    # 1) NCHW input, divisible path (zero-copy reshape), single block.
    x = jax.random.normal(k0, (2, 4, 16, 16), dtype=jnp.float32)
    y = jax.block_until_ready(mod(x))
    y_ref = jnp.maximum(x, jnp.float32(1.0))
    assert y.shape == x.shape and y.dtype == x.dtype
    assert jnp.allclose(y, y_ref), "mismatch vs reference (divisible path)"

    # 2) Awkward shape exercising the prefix-kernel + tiny-tail fallback path.
    x_odd = jax.random.normal(k1, (3, 5, 7, 11), dtype=jnp.float32)
    y_odd = jax.block_until_ready(mod(x_odd))
    assert jnp.allclose(y_odd, jnp.maximum(x_odd, jnp.float32(1.0))), "mismatch (tail path)"

    # 3) Multi-step grid with a short tail block (small target tile to force it),
    #    plus the donate/input_output_aliases path.
    x_big = jax.random.normal(k2, (20, 2048), dtype=jnp.float32)
    y_big = jax.block_until_ready(
        relu_with_offset(x_big, mod.offset, target_tile_elems=2048, donate_input=True)
    )
    assert jnp.allclose(y_big, jnp.maximum(x_big, jnp.float32(1.0))), "mismatch (tiled path)"

    # 4) bf16 input promotes against the fp32 parameter (torch.maximum semantics).
    x_bf = jax.random.normal(k3, (2, 4, 16, 16), dtype=jnp.bfloat16)
    y_bf = jax.block_until_ready(mod(x_bf))
    assert y_bf.dtype == jnp.float32, "expected fp32 result from bf16 x + fp32 param"
    assert jnp.allclose(y_bf, jnp.maximum(x_bf.astype(jnp.float32), jnp.float32(1.0))), \
        "mismatch (bf16 promotion path)"

    print("KERNEL_OK")
</pallas_src>

<mosaic_0001>
module attributes {stable_mosaic.version = 11 : i64} {
  func.func @_relu_offset_kernel(%arg0: i32, %arg1: memref<1xf32, #tpu.memory_space<smem>>, %arg2: memref<1x2048xf32, #tpu.memory_space<vmem>>, %arg3: memref<1x2048xf32, #tpu.memory_space<vmem>>) attributes {dimension_semantics = [#tpu.dimension_semantics<parallel>], iteration_bounds = array<i64: 1>, scalar_prefetch = 0 : i64, scratch_operands = 0 : i64, tpu.core_type = #tpu.core_type<tc>, window_params = [{transform_indices = @transform_0, window_bounds = array<i64: 1>}, {transform_indices = @transform_1, window_bounds = array<i64: 1, 2048>}, {transform_indices = @transform_2, window_bounds = array<i64: 1, 2048>}]} {
    %c0 = arith.constant 0 : index
    %c0_0 = arith.constant 0 : index
    %0 = vector.load %arg2[%c0, %c0_0] : memref<1x2048xf32, #tpu.memory_space<vmem>>, vector<1x2048xf32>
    %c0_1 = arith.constant 0 : index
    %1 = memref.load %arg1[%c0_1] : memref<1xf32, #tpu.memory_space<smem>>
    %2 = vector.broadcast %1 : f32 to vector<1x2048xf32>
    %3 = arith.maximumf %0, %2 : vector<1x2048xf32>
    %c0_2 = arith.constant 0 : index
    %c0_3 = arith.constant 0 : index
    %4 = vector.load %arg3[%c0_2, %c0_3] : memref<1x2048xf32, #tpu.memory_space<vmem>>, vector<1x2048xf32>
    tpu.vector_store %arg3[%c0_2, %c0_3], %3 {strides = array<i32>} : memref<1x2048xf32, #tpu.memory_space<vmem>>, vector<1x2048xf32>,
    return
  }
  func.func @transform_0(%arg0: i32) -> i32 {
    %c0_i32 = arith.constant 0 : i32
    %c0_i32_0 = arith.constant 0 : i32
    return %c0_i32 : i32
  }
  func.func @transform_1(%arg0: i32) -> (i32, i32) {
    %c0_i32 = arith.constant 0 : i32
    %c0_i32_0 = arith.constant 0 : i32
    return %arg0, %c0_i32 : i32, i32
  }
  func.func @transform_2(%arg0: i32) -> (i32, i32) {
    %c0_i32 = arith.constant 0 : i32
    %c0_i32_0 = arith.constant 0 : i32
    return %arg0, %c0_i32 : i32, i32
  }
}

</mosaic_0001>

<bundles_post_ra>
// kernel: tpu_custom_call.1
= control target key start
LH: loop header
LB: loop body
LE: loop exit
PB: predicated region body
PF: predicated region fallthrough
CT: control target
= control target key end

     0   :  { %8 = vsyncpa [#allocation4], 0  ;;  %s132_s0 = inlined_call_operand.<no memory space> [shape: f32[1], index: 0, kind: input, shape index: {}]   ;;  %s133_s1 = inlined_call_operand.hbm [shape: f32[1,2048], index: 1, kind: input, shape index: {}]   ;;  %s134_s2 = inlined_call_operand.hbm [shape: f32[1,2048], index: 2, kind: output, shape index: {}]  }
   0x1   :  { %9 = vsyncpa [#allocation5], 0  ;;  %s17_s11 = sshll.u32 %s133_s1, 4  ;;  %s106_s12 = smov [#allocation3]   ;;  %s18_s11 = int_to_ptr.hbm [resolvable:$true] %s17_s11 }
   0x2   :  { %s19_s13 = sshll.u32 %s106_s12, 4  ;;  %s20_s13 = int_to_ptr.vmem [resolvable:$true] %s19_s13 }
   0x3   :  { %22 = dma.hbm_to_vmem [thread:$0]  %s18_s11, 256, %s20_s13, [#allocation4]  }
   0x4   :  { %102 = dma.done.wait [#allocation4], 256  }
   0x5   :  { %103 = vsyncadd [#allocation4], 4294967040  ;;  %v30_v0 = vstv %s132_s0  ;;  %s107_s16 = smov [#allocation6]   ;;  %s42_s20 = sshll.u32 %s134_s2, 4  ;;  %v27_v1 = vld [vmem:[#allocation3] sm:$0xff]  ;;  %v28_v2 = vld [vmem:[#allocation3 + $0x8] sm:$0xff]  ;;  %s43_s20 = int_to_ptr.hbm [resolvable:$true] %s42_s20 }
   0x6   :  { %s40_s17 = sshll.u32 %s107_s16, 4  ;;  %v31_v3 = vmax.f32 %v27_v1, %v30_v0  ;;  %v32_v4 = vmax.f32 %v28_v2, %v30_v0  ;;  %s41_s17 = int_to_ptr.vmem [resolvable:$true] %s40_s17 }
   0x8   :  { %33 = vst [vmem:[#allocation6] sm:$0xff] %v31_v3 }
   0x9   :  { %34 = vst [vmem:[#allocation6 + $0x8] sm:$0xff] %v32_v4 }
   0xa   :  { %45 = dma.vmem_to_hbm [thread:$0]  %s41_s17, 256, %s43_s20, [#allocation5]  }
   0xb   :  { %104 = dma.done.wait [#allocation5], 256  }
   0xc   :  { %105 = vsyncadd [#allocation5], 4294967040 }
   0xd   :  { %50 = vsyncpa [#allocation4], 1 }
   0xe   :  { %51 = vsyncpa [#allocation5], 1 }

</bundles_post_ra>
